<compile_context>
chip_gen: v6e
topology: v6e:2x2x1
jax: 0.10.0
libtpu: 0.0.40
codegen_flags: <defaults>
</compile_context>

<pallas_src>
import math

import jax
import jax.numpy as jnp
from jax.experimental import pallas as pl
from jax.experimental.pallas import tpu as pltpu

HIDDEN = 100      # hidden width fixed by the module
LANE = 128        # TPU lane width -> pad hidden/output weight dims to this
SUBLANE = 8


def _round_up(n, m):
    return -(-n // m) * m


# ----------------------------------------------------------------------------
# Pallas kernel: fully fused 3-layer MLP (Linear+Softplus, Linear+Softplus,
# Linear).  All operands are VMEM-resident blocks; accumulation in f32,
# MXU operands in the weights' dtype (bf16 by default).
# ----------------------------------------------------------------------------
def _ratio_critic_kernel(x_ref, w1_ref, b1_ref, w2_ref, b2_ref,
                         w3_ref, b3_ref, o_ref):
    cdt = w1_ref.dtype                                   # MXU operand dtype
    # Layer 1: Linear -> Softplus (Dropout is eval-mode identity)
    h = jnp.dot(x_ref[...].astype(cdt), w1_ref[...],
                preferred_element_type=jnp.float32) + b1_ref[...]
    h = jnp.logaddexp(h, 0.0)                             # nn.Softplus(), f32
    # Layer 2: Linear -> Softplus (Dropout is eval-mode identity)
    h = jnp.dot(h.astype(cdt), w2_ref[...],
                preferred_element_type=jnp.float32) + b2_ref[...]
    h = jnp.logaddexp(h, 0.0)
    # Layer 3: output head
    y = jnp.dot(h.astype(cdt), w3_ref[...],
                preferred_element_type=jnp.float32) + b3_ref[...]
    # o_ref is either the lane-dense padded slab (small batch) or the narrow
    # (bm, dim_output) block (large batch) -> slice is identity in the former.
    o_ref[...] = y[:, :o_ref.shape[1]].astype(o_ref.dtype)


# ----------------------------------------------------------------------------
# Parameter prep (once, outside the hot path)
# ----------------------------------------------------------------------------
def init_params(key, dim_input, dim_output):
    """Synthetic params mirroring torch.nn.Linear's U(-1/sqrt(fin), 1/sqrt(fin))."""
    def linear(k, fin, fout):
        kw, kb = jax.random.split(k)
        bound = 1.0 / math.sqrt(fin)
        w = jax.random.uniform(kw, (fin, fout), jnp.float32, -bound, bound)
        b = jax.random.uniform(kb, (fout,), jnp.float32, -bound, bound)
        return w, b
    ks = jax.random.split(key, 3)
    return [linear(ks[0], dim_input, HIDDEN),
            linear(ks[1], HIDDEN, HIDDEN),
            linear(ks[2], HIDDEN, dim_output)]


def prepare_padded_params(layers, dim_input, dim_output,
                          param_dtype=jnp.bfloat16):
    """Pad hidden/output weight dims to 128 lanes, input dim only to a
    sublane multiple.  Weights in `param_dtype` (bf16 MXU), biases in f32.

    Padded hidden units see softplus(0)=log2, but the corresponding padded
    weight ROWS of the next layer are zero, so they contribute nothing
    downstream — numerics are exact up to the bf16 operand cast."""
    (w1, b1), (w2, b2), (w3, b3) = layers
    dinp = max(SUBLANE, _round_up(dim_input, SUBLANE))
    hp = _round_up(HIDDEN, LANE)
    np_ = _round_up(dim_output, LANE)

    def pad2(a, r, c, dt):
        return jnp.zeros((r, c), dt).at[:a.shape[0], :a.shape[1]].set(
            a.astype(dt))

    def pad1(a, c):
        return jnp.zeros((1, c), jnp.float32).at[0, :a.shape[0]].set(a)

    return dict(
        w1=pad2(w1, dinp, hp, param_dtype), b1=pad1(b1, hp),
        w2=pad2(w2, hp, hp, param_dtype), b2=pad1(b2, hp),
        w3=pad2(w3, hp, np_, param_dtype), b3=pad1(b3, np_),
        dim_input=int(dim_input), dim_output=int(dim_output),
    )


# ----------------------------------------------------------------------------
# Batch tiling: single tile for small batches; big tiles with <12.5% tail
# waste and >=2 grid steps (v7x megacore) for large batches.
# ----------------------------------------------------------------------------
def _tiling(m):
    mp8 = max(SUBLANE, _round_up(m, SUBLANE))
    if mp8 <= 256:
        return mp8, mp8                      # one tile, no grid overhead
    for bm in (1024, 512, 256, 128):
        mp = _round_up(mp8, bm)
        if mp // bm >= 2 and (mp - mp8) * 8 <= mp:   # >=2 steps, <12.5% waste
            return mp, bm
    return _round_up(mp8, 128), 128


# ----------------------------------------------------------------------------
# Forward wrapper: one pallas_call for the whole network
# ----------------------------------------------------------------------------
def ratio_critic_nn1d_forward(padded, x):
    m, din = x.shape
    dinp, hp = padded["w1"].shape
    np_ = padded["w3"].shape[1]
    dout = padded["dim_output"]

    mp, bm = _tiling(m)
    # Only pad batch rows (and, rarely, the feature dim up to a sublane
    # multiple) — never up to 128 lanes.
    if (mp, dinp) != (m, din):
        xp = jnp.zeros((mp, dinp), x.dtype).at[:m, :din].set(x)
    else:
        xp = x

    grid_steps = mp // bm
    # Multi-tile (large batch): narrow output -> 64x less HBM writeback for
    # dout=2.  Single tiny tile: keep the lane-dense padded slab (unmasked vst).
    narrow_out = grid_steps > 1
    n_out = dout if narrow_out else np_

    out = pl.pallas_call(
        _ratio_critic_kernel,
        grid=(grid_steps,),
        in_specs=[
            pl.BlockSpec((bm, dinp), lambda i: (i, 0)),   # x tile (full last dim)
            pl.BlockSpec((dinp, hp), lambda i: (0, 0)),   # W1
            pl.BlockSpec((1, hp), lambda i: (0, 0)),      # b1
            pl.BlockSpec((hp, hp), lambda i: (0, 0)),     # W2
            pl.BlockSpec((1, hp), lambda i: (0, 0)),      # b2
            pl.BlockSpec((hp, np_), lambda i: (0, 0)),    # W3
            pl.BlockSpec((1, np_), lambda i: (0, 0)),     # b3
        ],
        out_specs=pl.BlockSpec((bm, n_out), lambda i: (i, 0)),
        out_shape=jax.ShapeDtypeStruct((mp, n_out), jnp.float32),
        compiler_params=pltpu.CompilerParams(
            dimension_semantics=("parallel",)),
    )(xp, padded["w1"], padded["b1"], padded["w2"], padded["b2"],
      padded["w3"], padded["b3"])

    return out[:m] if narrow_out else out[:m, :dout]


# ----------------------------------------------------------------------------
# Pure-JAX reference (eval-mode semantics, f32 params) for correctness checks
# ----------------------------------------------------------------------------
def reference_forward(layers, x):
    (w1, b1), (w2, b2), (w3, b3) = layers
    h = jnp.logaddexp(x @ w1 + b1, 0.0)
    h = jnp.logaddexp(h @ w2 + b2, 0.0)
    return h @ w3 + b3


if __name__ == "__main__":
    key = jax.random.PRNGKey(0)
    k_params, k_x1, k_x2 = jax.random.split(key, 3)

    dim_input = 32
    dim_output = 2

    layers = init_params(k_params, dim_input, dim_output)
    padded = prepare_padded_params(layers, dim_input, dim_output)  # bf16 weights

    # --- Test 1: tiny batch (single-tile, lane-dense output path) ------------
    batch = 2
    x = jax.random.normal(k_x1, (batch, dim_input), jnp.float32)
    out = ratio_critic_nn1d_forward(padded, x)
    jax.block_until_ready(out)
    ref = reference_forward(layers, x)
    assert out.shape == (batch, dim_output)
    assert bool(jnp.all(jnp.isfinite(out)))
    # bf16 MXU operands -> loosened tolerance vs the f32 reference.
    assert bool(jnp.allclose(out, ref, atol=3e-2, rtol=3e-2))

    # --- Test 2: larger batch (multi-tile grid + narrow output path) ---------
    batch2 = 300
    x2 = jax.random.normal(k_x2, (batch2, dim_input), jnp.float32)
    out2 = ratio_critic_nn1d_forward(padded, x2)
    jax.block_until_ready(out2)
    ref2 = reference_forward(layers, x2)
    assert out2.shape == (batch2, dim_output)
    assert bool(jnp.all(jnp.isfinite(out2)))
    assert bool(jnp.allclose(out2, ref2, atol=3e-2, rtol=3e-2))

    print("KERNEL_OK")
</pallas_src>

<mosaic_0001>
module attributes {stable_mosaic.version = 11 : i64} {
  func.func @_ratio_critic_kernel(%arg0: i32, %arg1: memref<8x32xf32, #tpu.memory_space<vmem>>, %arg2: memref<32x128xbf16, #tpu.memory_space<vmem>>, %arg3: memref<1x128xf32, #tpu.memory_space<vmem>>, %arg4: memref<128x128xbf16, #tpu.memory_space<vmem>>, %arg5: memref<1x128xf32, #tpu.memory_space<vmem>>, %arg6: memref<128x128xbf16, #tpu.memory_space<vmem>>, %arg7: memref<1x128xf32, #tpu.memory_space<vmem>>, %arg8: memref<8x128xf32, #tpu.memory_space<vmem>>) attributes {dimension_semantics = [#tpu.dimension_semantics<parallel>], iteration_bounds = array<i64: 1>, scalar_prefetch = 0 : i64, scratch_operands = 0 : i64, tpu.core_type = #tpu.core_type<tc>, window_params = [{transform_indices = @transform_0, window_bounds = array<i64: 8, 32>}, {pipeline_mode = #tpu.pipeline_mode<synchronous>, transform_indices = @transform_1, window_bounds = array<i64: 32, 128>}, {pipeline_mode = #tpu.pipeline_mode<synchronous>, transform_indices = @transform_2, window_bounds = array<i64: 1, 128>}, {pipeline_mode = #tpu.pipeline_mode<synchronous>, transform_indices = @transform_3, window_bounds = array<i64: 128, 128>}, {pipeline_mode = #tpu.pipeline_mode<synchronous>, transform_indices = @transform_4, window_bounds = array<i64: 1, 128>}, {pipeline_mode = #tpu.pipeline_mode<synchronous>, transform_indices = @transform_5, window_bounds = array<i64: 128, 128>}, {pipeline_mode = #tpu.pipeline_mode<synchronous>, transform_indices = @transform_6, window_bounds = array<i64: 1, 128>}, {transform_indices = @transform_7, window_bounds = array<i64: 8, 128>}]} {
    %c0 = arith.constant 0 : index
    %c0_0 = arith.constant 0 : index
    %0 = vector.load %arg1[%c0, %c0_0] : memref<8x32xf32, #tpu.memory_space<vmem>>, vector<8x32xf32>
    %1 = arith.truncf %0 : vector<8x32xf32> to vector<8x32xbf16>
    %c0_1 = arith.constant 0 : index
    %c0_2 = arith.constant 0 : index
    %2 = vector.load %arg2[%c0_1, %c0_2] : memref<32x128xbf16, #tpu.memory_space<vmem>>, vector<32x128xbf16>
    %cst = arith.constant dense<0.000000e+00> : vector<8x128xf32>
    %3 = tpu.matmul %1, %2, %cst {dimension_numbers = #tpu.dot_dimension_numbers<[1], [0], [0], [1], [0, 0, 1, 1], [], []>} : vector<8x32xbf16>, vector<32x128xbf16>, vector<8x128xf32> -> vector<8x128xf32>
    %c0_3 = arith.constant 0 : index
    %c0_4 = arith.constant 0 : index
    %4 = vector.load %arg3[%c0_3, %c0_4] : memref<1x128xf32, #tpu.memory_space<vmem>>, vector<1x128xf32>
    %5 = vector.broadcast %4 : vector<1x128xf32> to vector<8x128xf32>
    %6 = arith.addf %3, %5 : vector<8x128xf32>
    %cst_5 = arith.constant 0.000000e+00 : f32
    %7 = vector.broadcast %cst_5 : f32 to vector<8x128xf32>
    %8 = arith.maximumf %6, %7 : vector<8x128xf32>
    %9 = vector.broadcast %cst_5 : f32 to vector<8x128xf32>
    %10 = arith.subf %6, %9 : vector<8x128xf32>
    %11 = arith.cmpf one, %10, %10 : vector<8x128xf32>
    %12 = vector.broadcast %cst_5 : f32 to vector<8x128xf32>
    %13 = arith.addf %6, %12 : vector<8x128xf32>
    %14 = math.absf %10 : vector<8x128xf32>
    %cst_6 = arith.constant 0.000000e+00 : f32
    %15 = vector.broadcast %cst_6 : f32 to vector<8x128xf32>
    %16 = arith.subf %15, %14 : vector<8x128xf32>
    %17 = math.exp %16 : vector<8x128xf32>
    %18 = math.log1p %17 : vector<8x128xf32>
    %19 = arith.addf %8, %18 : vector<8x128xf32>
    %20 = arith.select %11, %13, %19 : vector<8x128xi1>, vector<8x128xf32>
    %21 = arith.truncf %20 : vector<8x128xf32> to vector<8x128xbf16>
    %c0_7 = arith.constant 0 : index
    %c0_8 = arith.constant 0 : index
    %22 = vector.load %arg4[%c0_7, %c0_8] : memref<128x128xbf16, #tpu.memory_space<vmem>>, vector<128x128xbf16>
    %cst_9 = arith.constant dense<0.000000e+00> : vector<8x128xf32>
    %23 = tpu.matmul %21, %22, %cst_9 {dimension_numbers = #tpu.dot_dimension_numbers<[1], [0], [0], [1], [0, 0, 1, 1], [], []>} : vector<8x128xbf16>, vector<128x128xbf16>, vector<8x128xf32> -> vector<8x128xf32>
    %c0_10 = arith.constant 0 : index
    %c0_11 = arith.constant 0 : index
    %24 = vector.load %arg5[%c0_10, %c0_11] : memref<1x128xf32, #tpu.memory_space<vmem>>, vector<1x128xf32>
    %25 = vector.broadcast %24 : vector<1x128xf32> to vector<8x128xf32>
    %26 = arith.addf %23, %25 : vector<8x128xf32>
    %cst_12 = arith.constant 0.000000e+00 : f32
    %27 = vector.broadcast %cst_12 : f32 to vector<8x128xf32>
    %28 = arith.maximumf %26, %27 : vector<8x128xf32>
    %29 = vector.broadcast %cst_12 : f32 to vector<8x128xf32>
    %30 = arith.subf %26, %29 : vector<8x128xf32>
    %31 = arith.cmpf one, %30, %30 : vector<8x128xf32>
    %32 = vector.broadcast %cst_12 : f32 to vector<8x128xf32>
    %33 = arith.addf %26, %32 : vector<8x128xf32>
    %34 = math.absf %30 : vector<8x128xf32>
    %cst_13 = arith.constant 0.000000e+00 : f32
    %35 = vector.broadcast %cst_13 : f32 to vector<8x128xf32>
    %36 = arith.subf %35, %34 : vector<8x128xf32>
    %37 = math.exp %36 : vector<8x128xf32>
    %38 = math.log1p %37 : vector<8x128xf32>
    %39 = arith.addf %28, %38 : vector<8x128xf32>
    %40 = arith.select %31, %33, %39 : vector<8x128xi1>, vector<8x128xf32>
    %41 = arith.truncf %40 : vector<8x128xf32> to vector<8x128xbf16>
    %c0_14 = arith.constant 0 : index
    %c0_15 = arith.constant 0 : index
    %42 = vector.load %arg6[%c0_14, %c0_15] : memref<128x128xbf16, #tpu.memory_space<vmem>>, vector<128x128xbf16>
    %cst_16 = arith.constant dense<0.000000e+00> : vector<8x128xf32>
    %43 = tpu.matmul %41, %42, %cst_16 {dimension_numbers = #tpu.dot_dimension_numbers<[1], [0], [0], [1], [0, 0, 1, 1], [], []>} : vector<8x128xbf16>, vector<128x128xbf16>, vector<8x128xf32> -> vector<8x128xf32>
    %c0_17 = arith.constant 0 : index
    %c0_18 = arith.constant 0 : index
    %44 = vector.load %arg7[%c0_17, %c0_18] : memref<1x128xf32, #tpu.memory_space<vmem>>, vector<1x128xf32>
    %45 = vector.broadcast %44 : vector<1x128xf32> to vector<8x128xf32>
    %46 = arith.addf %43, %45 : vector<8x128xf32>
    %c0_19 = arith.constant 0 : index
    %c0_20 = arith.constant 0 : index
    %47 = vector.load %arg8[%c0_19, %c0_20] : memref<8x128xf32, #tpu.memory_space<vmem>>, vector<8x128xf32>
    tpu.vector_store %arg8[%c0_19, %c0_20], %46 {strides = array<i32>} : memref<8x128xf32, #tpu.memory_space<vmem>>, vector<8x128xf32>,
    return
  }
  func.func @transform_0(%arg0: i32) -> (i32, i32) {
    %c0_i32 = arith.constant 0 : i32
    %c0_i32_0 = arith.constant 0 : i32
    return %arg0, %c0_i32 : i32, i32
  }
  func.func @transform_1(%arg0: i32) -> (i32, i32) {
    %c0_i32 = arith.constant 0 : i32
    %c0_i32_0 = arith.constant 0 : i32
    %c0_i32_1 = arith.constant 0 : i32
    return %c0_i32, %c0_i32_0 : i32, i32
  }
  func.func @transform_2(%arg0: i32) -> (i32, i32) {
    %c0_i32 = arith.constant 0 : i32
    %c0_i32_0 = arith.constant 0 : i32
    %c0_i32_1 = arith.constant 0 : i32
    return %c0_i32, %c0_i32_0 : i32, i32
  }
  func.func @transform_3(%arg0: i32) -> (i32, i32) {
    %c0_i32 = arith.constant 0 : i32
    %c0_i32_0 = arith.constant 0 : i32
    %c0_i32_1 = arith.constant 0 : i32
    return %c0_i32, %c0_i32_0 : i32, i32
  }
  func.func @transform_4(%arg0: i32) -> (i32, i32) {
    %c0_i32 = arith.constant 0 : i32
    %c0_i32_0 = arith.constant 0 : i32
    %c0_i32_1 = arith.constant 0 : i32
    return %c0_i32, %c0_i32_0 : i32, i32
  }
  func.func @transform_5(%arg0: i32) -> (i32, i32) {
    %c0_i32 = arith.constant 0 : i32
    %c0_i32_0 = arith.constant 0 : i32
    %c0_i32_1 = arith.constant 0 : i32
    return %c0_i32, %c0_i32_0 : i32, i32
  }
  func.func @transform_6(%arg0: i32) -> (i32, i32) {
    %c0_i32 = arith.constant 0 : i32
    %c0_i32_0 = arith.constant 0 : i32
    %c0_i32_1 = arith.constant 0 : i32
    return %c0_i32, %c0_i32_0 : i32, i32
  }
  func.func @transform_7(%arg0: i32) -> (i32, i32) {
    %c0_i32 = arith.constant 0 : i32
    %c0_i32_0 = arith.constant 0 : i32
    return %arg0, %c0_i32 : i32, i32
  }
}

</mosaic_0001>

<bundles_post_ra>
// kernel: tpu_custom_call.1
= control target key start
LH: loop header
LB: loop body
LE: loop exit
PB: predicated region body
PF: predicated region fallthrough
CT: control target
= control target key end

     0   :  { %12 = vsyncpa [#allocation3], 0  ;;  %s765_s0 = inlined_call_operand.hbm [shape: f32[8,32], index: 0, kind: input, shape index: {}]   ;;  %s766_s1 = inlined_call_operand.hbm [shape: bf16[32,128], index: 1, kind: input, shape index: {}]   ;;  %s767_s2 = inlined_call_operand.vmem [shape: f32[1,128], index: 2, kind: input, shape index: {}]   ;;  %s768_s3 = inlined_call_operand.hbm [shape: bf16[128,128], index: 3, kind: input, shape index: {}]   ;;  %s769_s4 = inlined_call_operand.vmem [shape: f32[1,128], index: 4, kind: input, shape index: {}]   ;;  %s770_s5 = inlined_call_operand.hbm [shape: bf16[128,128], index: 5, kind: input, shape index: {}]   ;;  %s771_s6 = inlined_call_operand.vmem [shape: f32[1,128], index: 6, kind: input, shape index: {}]   ;;  %s772_s7 = inlined_call_operand.hbm [shape: f32[8,128], index: 7, kind: output, shape index: {}]  }
   0x1   :  { %13 = vsyncpa [#allocation6], 0 }
   0x2   :  { %14 = vsyncpa [#allocation9], 0 }
   0x3   :  { %15 = vsyncpa [#allocation4], 0  ;;  %s662_s24 = smov [#allocation5]  }
   0x4   :  { %s31_s25 = sshll.u32 %s662_s24, 4  ;;  %s32_s25 = int_to_ptr.vmem [resolvable:$true] %s31_s25 }
   0x5   :  { %s562_s26 = scalar_lea.vmem %s32_s25, 256  ;;  %p567_p1 = scmp.lt.s32.totalorder %s32_s25, %s32_s25 }
   0x6   :  { %p563_p0 = scmp.ne.s32.totalorder %s32_s25, %s562_s26  ;;  %p568_p2 = scmp.lt.s32.totalorder %s562_s26, %s562_s26 }
   0x8   :  { %p569_p3 = por %p568_p2, %p567_p1 }
   0xa   :  { %p570_p4 = pnand %p569_p3, %p563_p0 }
   0xc   :  { %573 = shalt.err (!%p570_p4)
}
   0xd   :  { %s663_s27 = smov 64   ;;  %s664_s28 = smov 4  }
   0xe   :  { %37 = dma.hbm_to_vmem [thread:$0]  %s766_s1, 256, %s32_s25, [#allocation6], %s663_s27, %s663_s27, %s664_s28  }
   0xf   :  { %s665_s8 = smov [#allocation2]   ;;  %s666_s10 = smov [#allocation7]  }
  0x10   :  { %s22_s9 = sshll.u32 %s665_s8, 4  ;;  %s45_s11 = sshll.u32 %s666_s10, 4  ;;  %s23_s9 = int_to_ptr.vmem [resolvable:$true] %s22_s9  ;;  %s46_s11 = int_to_ptr.vmem [resolvable:$true] %s45_s11 }
  0x11   :  { %s582_s12 = scalar_lea.vmem %s23_s9, 128  ;;  %p587_p6 = scmp.lt.s32.totalorder %s23_s9, %s23_s9 }
  0x12   :  { %p583_p5 = scmp.ne.s32.totalorder %s23_s9, %s582_s12  ;;  %p588_p7 = scmp.lt.s32.totalorder %s582_s12, %s582_s12 }
  0x14   :  { %p589_p8 = por %p588_p7, %p587_p6 }
  0x16   :  { %p590_p9 = pnand %p589_p8, %p583_p5 }
  0x18   :  { %593 = shalt.err (!%p590_p9)
}
  0x19   :  { %25 = dma.hbm_to_vmem [thread:$0]  %s765_s0, 128, %s23_s9, [#allocation3]  }
  0x1a   :  { %s602_s15 = scalar_lea.vmem %s46_s11, 1024  ;;  %p607_p11 = scmp.lt.s32.totalorder %s46_s11, %s46_s11 }
  0x1b   :  { %p603_p10 = scmp.ne.s32.totalorder %s46_s11, %s602_s15  ;;  %p608_p12 = scmp.lt.s32.totalorder %s602_s15, %s602_s15 }
  0x1d   :  { %p609_p13 = por %p608_p12, %p607_p11 }
  0x1f   :  { %p610_p0 = pnand %p609_p13, %p603_p10 }
  0x21   :  { %613 = shalt.err (!%p610_p0)
}
  0x22   :  { %51 = dma.hbm_to_vmem [thread:$0]  %s768_s3, 1024, %s46_s11, [#allocation6], %s663_s27, %s663_s27, %s664_s28  }
  0x23   :  { %s667_s17 = smov [#allocation8]  }
  0x24   :  { %s59_s18 = sshll.u32 %s667_s17, 4  ;;  %s60_s18 = int_to_ptr.vmem [resolvable:$true] %s59_s18 }
  0x25   :  { %s622_s19 = scalar_lea.vmem %s60_s18, 1024  ;;  %p627_p2 = scmp.lt.s32.totalorder %s60_s18, %s60_s18 }
  0x26   :  { %p623_p1 = scmp.ne.s32.totalorder %s60_s18, %s622_s19  ;;  %p628_p3 = scmp.lt.s32.totalorder %s622_s19, %s622_s19 }
  0x28   :  { %p629_p4 = por %p628_p3, %p627_p2 }
  0x2a   :  { %p630_p5 = pnand %p629_p4, %p623_p1 }
  0x2c   :  { %633 = shalt.err (!%p630_p5)
}
  0x2d   :  { %65 = dma.hbm_to_vmem [thread:$0]  %s770_s5, 1024, %s60_s18, [#allocation9], %s663_s27, %s663_s27, %s664_s28  }
  0x2e   :  { %654 = dma.done.wait [#allocation3], 128  }
  0x2f   :  { %655 = vsyncadd [#allocation3], 4294967168 }
  0x30   :  { %656 = dma.done.wait [#allocation6], 1280  }
  0x31   :  { %657 = vsyncadd [#allocation6], 4294966016 }
  0x32   :  { %658 = dma.done.wait [#allocation9], 1024  }
  0x33   :  { %659 = vsyncadd [#allocation9], 4294966272  ;;  %v668_v0 = vmov 0.0   ;;  %vm669_vm0 = vmmov 0   ;;  %v528_v1 = vld [vmem:[#allocation5 + $0x8] sm:$0xff]   ;;  %v529_v2 = vld [vmem:[#allocation5] sm:$0xff]  }
  0x34   :  { %471 = vmatprep.subr.bf16.mxu0 %v668_v0  ;;  %475 = vmatprep.mubr.msk.bf16.mxu0 %vm669_vm0, %v668_v0  ;;  %v81_v3 = vld [vmem:[#allocation2] sm:$0xff]  ;;  %vm106_vm1 = vcmask 261120   ;;  %v530_v5 = vld [vmem:[#allocation7 + $0x38] sm:$0xff]   ;;  %v531_v6 = vld [vmem:[#allocation7 + $0x30] sm:$0xff]   ;;  %s670_s23 = smov [#allocation10]  }
  0x35   :  { %479 = vmatprep.subr.bf16.mxu1 %v668_v0  ;;  %495 = vmatprep.mubr.msk.bf16.mxu1 %vm669_vm0, %v668_v0  ;;  %v82_v4 = vpack.c.bf16 %v81_v3, %v81_v3  ;;  %v532_v7 = vld [vmem:[#allocation7 + $0x28] sm:$0xff]   ;;  %v533_v8 = vld [vmem:[#allocation7 + $0x20] sm:$0xff]   ;;  %v534_v9 = vld [vmem:[#allocation7 + $0x18] sm:$0xff]   ;;  %s417_s24 = sshll.u32 %s670_s23, 4  ;;  %s418_s24 = int_to_ptr.vmem [resolvable:$true] %s417_s24 }
  0x36   :  { %472 = vmatpush3.bf16.msra.mxu0 %v528_v1  ;;  %480 = vmatpush3.bf16.msra.mxu1 %v530_v5  ;;  %v535_v10 = vld [vmem:[#allocation7 + $0x10] sm:$0xff]   ;;  %v536_v11 = vld [vmem:[#allocation7 + $0x8] sm:$0xff]   ;;  %v537_v12 = vld [vmem:[#allocation7] sm:$0xff]   ;;  %s634_s25 = scalar_lea.vmem %s418_s24, 128  ;;  %p639_p7 = scmp.lt.s32.totalorder %s418_s24, %s418_s24 }
  0x37   :  { %473 = vmatprep.subr.bf16.mxu0 %v668_v0  ;;  %481 = vmatprep.subr.bf16.mxu1 %v668_v0  ;;  %v428_v13 = vld [vmem:[%s767_s2] ss:$0 sm:$0xff]  ;;  %v538_v35 = vld [vmem:[#allocation8 + $0x38] sm:$0xff]   ;;  %v539_v36 = vld [vmem:[#allocation8 + $0x30] sm:$0xff]   ;;  %p635_p6 = scmp.ne.s32.totalorder %s418_s24, %s634_s25  ;;  %p640_p8 = scmp.lt.s32.totalorder %s634_s25, %s634_s25 }
  0x38   :  { %v540_v37 = vld [vmem:[#allocation8 + $0x28] sm:$0xff]   ;;  %v541_v38 = vld [vmem:[#allocation8 + $0x20] sm:$0xff]   ;;  %v542_v39 = vld [vmem:[#allocation8 + $0x18] sm:$0xff]  }
  0x39   :  { %v543_v40 = vld [vmem:[#allocation8 + $0x10] sm:$0xff]   ;;  %v544_v41 = vld [vmem:[#allocation8 + $0x8] sm:$0xff]   ;;  %v545_v42 = vld [vmem:[#allocation8] sm:$0xff]   ;;  %p641_p9 = por %p640_p8, %p639_p7 }
  0x3a   :  { %474 = vmatpush3.bf16.msra.mxu0 %v529_v2  ;;  %482 = vmatpush3.bf16.msra.mxu1 %v531_v6  ;;  %v432_v43 = vld [vmem:[%s769_s4] ss:$0 sm:$0xff] }
  0x3b   :  { %499 = vmatprep.subr.bf16.mxu0 %v668_v0  ;;  %483 = vmatprep.subr.bf16.mxu1 %v668_v0  ;;  %v441_v1 = vld [vmem:[%s771_s6] ss:$0 sm:$0xff]  ;;  %p642_p10 = pnand %p641_p9, %p635_p6 }
  0x3d   :  { %476 = vmatmul.mubr.msk.bf16.vlgmr.msra.gmra.mxu0 %vm106_vm1, %v82_v4 }
  0x3e   :  { %515 = vmatprep.mubr.msk.bf16.mxu0 %vm669_vm0, %v668_v0  ;;  %484 = vmatpush3.bf16.msra.mxu1 %v532_v7 }
  0x3f   :  { %485 = vmatprep.subr.bf16.mxu1 %v668_v0  ;;  %500 = vmatpush3.bf16.msra.mxu0 %v538_v35 }
  0x40   :  { %501 = vmatprep.subr.bf16.mxu0 %v668_v0 }
  0x42   :  { %486 = vmatpush3.bf16.msra.mxu1 %v533_v8 }
  0x43   :  { %487 = vmatprep.subr.bf16.mxu1 %v668_v0  ;;  %502 = vmatpush3.bf16.msra.mxu0 %v539_v36 }
  0x44   :  { %503 = vmatprep.subr.bf16.mxu0 %v668_v0 }
  0x46   :  { %488 = vmatpush3.bf16.msra.mxu1 %v534_v9 }
  0x47   :  { %489 = vmatprep.subr.bf16.mxu1 %v668_v0  ;;  %504 = vmatpush3.bf16.msra.mxu0 %v540_v37 }
  0x48   :  { %505 = vmatprep.subr.bf16.mxu0 %v668_v0 }
  0x4a   :  { %490 = vmatpush3.bf16.msra.mxu1 %v535_v10 }
  0x4b   :  { %491 = vmatprep.subr.bf16.mxu1 %v668_v0  ;;  %506 = vmatpush3.bf16.msra.mxu0 %v541_v38 }
  0x4c   :  { %507 = vmatprep.subr.bf16.mxu0 %v668_v0 }
  0x4e   :  { %492 = vmatpush3.bf16.msra.mxu1 %v536_v11 }
  0x4f   :  { %493 = vmatprep.subr.bf16.mxu1 %v668_v0  ;;  %508 = vmatpush3.bf16.msra.mxu0 %v542_v39 }
  0x50   :  { %509 = vmatprep.subr.bf16.mxu0 %v668_v0 }
  0x52   :  { %494 = vmatpush3.bf16.msra.mxu1 %v537_v12 }
  0x53   :  { %510 = vmatpush3.bf16.msra.mxu0 %v543_v40 }
  0x54   :  { %511 = vmatprep.subr.bf16.mxu0 %v668_v0 }
  0x57   :  { %512 = vmatpush3.bf16.msra.mxu0 %v544_v41 }
  0x58   :  { %513 = vmatprep.subr.bf16.mxu0 %v668_v0 }
  0x5b   :  { %514 = vmatpush3.bf16.msra.mxu0 %v545_v42 }
  0xfd   :  { %v144_v14 = vpop.f32.mrf.mxu0 }
  0xfe   :  { %v145_v15 = vadd.f32 %v428_v13, %v144_v14 }
  0xff   :  { %v477_v16 = vpop.f32.mrf.mxu0 }
 0x100   :  { %v153_v17 = vand.u32 2147483647, %v145_v15  ;;  %v150_v30 = vmax.f32 %v145_v15, 0.0  ;;  %vm151_vm3 = vcmp.ne.f32.partialorder %v145_v15, %v145_v15 }
 0x101   :  { %v147_v18 = vpop.f32.mrf.mxu0 }
 0x102   :  { %v154_v19 = vsub.f32 0.0, %v153_v17 }
 0x103   :  { %v478_v20 = vpop.f32.mrf.mxu0 }
 0x104   :  { %v155_v21 = vmul.f32 1.442695, %v154_v19 }
 0x106   :  { %546 = vpow2.f32 %v155_v21 }
 0x113   :  { %v547_v22 = vpop.eup %546 }
 0x114   :  { %v157_v23 = vadd.f32 1.0, %v547_v22  ;;  %v160_v24 = vmul.f32 -0.5, %v547_v22  ;;  %v163_v26 = vand.u32 2147483647, %v547_v22 }
 0x116   :  { %548 = vlog2.f32 %v157_v23  ;;  %v161_v25 = vadd.f32 1.0, %v160_v24  ;;  %vm164_vm2 = vcmp.lt.f32.partialorder %v163_v26, 0.0004427343 }
 0x118   :  { %v162_v29 = vmul.f32 %v547_v22, %v161_v25 }
 0x123   :  { %v549_v27 = vpop.eup %548 }
 0x124   :  { %v159_v28 = vmul.f32 0.6931472, %v549_v27 }
 0x126   :  { %v165_v31 = vsel %vm164_vm2, %v162_v29, %v159_v28 }
 0x127   :  { %v166_v32 = vadd.f32 %v165_v31, %v150_v30 }
 0x129   :  { %v167_v33 = vsel %vm151_vm3, %v145_v15, %v166_v32 }
 0x12a   :  { %v168_v34 = vpack.c.bf16 %v167_v33, %v167_v33 }
 0x12c   :  { %496 = vmatmul.mubr.bf16.vlgmr.msra.gmra.mxu1 %v168_v34 }
 0x1ec   :  { %v274_v44 = vpop.f32.mrf.mxu1 }
 0x1ed   :  { %v275_v45 = vadd.f32 %v432_v43, %v274_v44 }
 0x1ee   :  { %v497_v46 = vpop.f32.mrf.mxu1 }
 0x1ef   :  { %v283_v47 = vand.u32 2147483647, %v275_v45  ;;  %v280_v60 = vmax.f32 %v275_v45, 0.0  ;;  %vm281_vm5 = vcmp.ne.f32.partialorder %v275_v45, %v275_v45 }
 0x1f0   :  { %v277_v48 = vpop.f32.mrf.mxu1 }
 0x1f1   :  { %v284_v49 = vsub.f32 0.0, %v283_v47 }
 0x1f2   :  { %v498_v50 = vpop.f32.mrf.mxu1 }
 0x1f3   :  { %v285_v51 = vmul.f32 1.442695, %v284_v49 }
 0x1f5   :  { %550 = vpow2.f32 %v285_v51 }
 0x202   :  { %v551_v52 = vpop.eup %550 }
 0x203   :  { %v287_v53 = vadd.f32 1.0, %v551_v52  ;;  %v290_v54 = vmul.f32 -0.5, %v551_v52  ;;  %v293_v56 = vand.u32 2147483647, %v551_v52 }
 0x205   :  { %552 = vlog2.f32 %v287_v53  ;;  %v291_v55 = vadd.f32 1.0, %v290_v54  ;;  %vm294_vm4 = vcmp.lt.f32.partialorder %v293_v56, 0.0004427343 }
 0x207   :  { %v292_v59 = vmul.f32 %v551_v52, %v291_v55 }
 0x212   :  { %v553_v57 = vpop.eup %552 }
 0x213   :  { %v289_v58 = vmul.f32 0.6931472, %v553_v57 }
 0x215   :  { %v295_v61 = vsel %vm294_vm4, %v292_v59, %v289_v58 }
 0x216   :  { %v296_v62 = vadd.f32 %v295_v61, %v280_v60 }
 0x218   :  { %v297_v63 = vsel %vm281_vm5, %v275_v45, %v296_v62 }
 0x219   :  { %v298_v0 = vpack.c.bf16 %v297_v63, %v297_v63 }
 0x21b   :  { %516 = vmatmul.mubr.bf16.vlgmr.msra.gmra.mxu0 %v298_v0 }
 0x2db   :  { %v404_v2 = vpop.f32.mrf.mxu0 }
 0x2dc   :  { %v405_v3 = vadd.f32 %v441_v1, %v404_v2 }
 0x2dd   :  { %v517_v4 = vpop.f32.mrf.mxu0 }
 0x2de   :  { %410 = vst [vmem:[#allocation10] sm:$0xff] %v405_v3 }
 0x2df   :  { %v407_v5 = vpop.f32.mrf.mxu0 }
 0x2e0   :  { %645 = shalt.err (!%p642_p10)
}
 0x2e1   :  { %420 = dma.vmem_to_hbm [thread:$0]  %s418_s24, 128, %s772_s7, [#allocation4]   ;;  %v518_v6 = vpop.f32.mrf.mxu0 }
 0x2e2   :  { %660 = dma.done.wait [#allocation4], 128  }
 0x2e3   :  { %661 = vsyncadd [#allocation4], 4294967168 }
 0x2e4   :  { %424 = vsyncpa [#allocation3], 1 }
 0x2e5   :  { %425 = vsyncpa [#allocation6], 1 }
 0x2e6   :  { %426 = vsyncpa [#allocation9], 1 }
 0x2e7   :  { %427 = vsyncpa [#allocation4], 1 }

</bundles_post_ra>
